<compile_context>
chip_gen: v7x
topology: tpu7x:2x2x1
jax: 0.10.0
libtpu: 0.0.40
codegen_flags: <defaults>
</compile_context>

<pallas_src>
import functools

import jax
import jax.numpy as jnp
from jax import lax
from jax.experimental import pallas as pl
from jax.experimental.pallas import tpu as pltpu


def _upblock_kernel(x_ref, w_ref, o_ref, *, H, W):
    """One image per grid step.

    x_ref: (1, Cin, H*W)      original-resolution input, spatially flattened
    w_ref: (16, Cout, Cin)    effective 2x2 sub-pixel weights ((py,px,a,b) major)
    o_ref: (1, 4, Cout, H*W)  parity-separated output (py*2+px major)
    """
    HW = H * W
    Cout = o_ref.shape[2]

    x = x_ref[0].astype(jnp.float32)                      # (Cin, HW)

    # Boundary masks for the clamped (replicate) 1-pixel neighborhood.
    k = lax.broadcasted_iota(jnp.int32, (1, HW), 1)
    col = k % W
    first_col = col == 0
    last_col = col == W - 1
    first_row = k < W
    last_row = k >= (H - 1) * W

    def shift(v, amt):
        # out[:, k] = v[:, k + amt] (wrapped entries are fixed by the masks).
        a = amt % HW
        return jnp.concatenate([v[:, a:], v[:, :a]], axis=1)

    # Column taps c = 0,1,2  ->  left / self / right neighbor, edge-replicated.
    col_taps = (
        jnp.where(first_col, x, shift(x, -1)),
        x,
        jnp.where(last_col, x, shift(x, 1)),
    )

    # 4 parity accumulators (py, px), each (Cout, HW), f32, lane-dense.
    accs = [jnp.zeros((Cout, HW), jnp.float32) for _ in range(4)]

    # Loop over the 9 shifted taps of the (replicate-padded) original image;
    # each tap feeds the parity classes whose 2x2 footprint covers it.
    for r in range(3):
        for c in range(3):
            ct = col_taps[c]
            if r == 0:
                tap = jnp.where(first_row, ct, shift(ct, -W))   # row above
            elif r == 1:
                tap = ct                                        # same row
            else:
                tap = jnp.where(last_row, ct, shift(ct, W))     # row below
            for py in range(2):
                a = r - py
                if a < 0 or a > 1:
                    continue
                for px in range(2):
                    b = c - px
                    if b < 0 or b > 1:
                        continue
                    widx = ((py * 2 + px) * 2 + a) * 2 + b
                    w_tap = w_ref[widx].astype(jnp.float32)     # (Cout, Cin)
                    p = py * 2 + px
                    accs[p] = accs[p] + jnp.dot(
                        w_tap, tap, preferred_element_type=jnp.float32)

    # InstanceNorm2d (affine=False): per-channel stats over all 2H*2W outputs,
    # single pass via sum and sum-of-squares.
    s = jnp.zeros((Cout, 1), jnp.float32)
    ss = jnp.zeros((Cout, 1), jnp.float32)
    for acc in accs:
        s = s + jnp.sum(acc, axis=1, keepdims=True)
        ss = ss + jnp.sum(acc * acc, axis=1, keepdims=True)
    inv_cnt = 1.0 / (4.0 * HW)
    mean = s * inv_cnt
    var = ss * inv_cnt - mean * mean
    inv_std = lax.rsqrt(var + 1e-5)

    # Normalize + LeakyReLU(0.01), store lane-dense / channel-major.
    for p, acc in enumerate(accs):
        y = (acc - mean) * inv_std
        y = jnp.where(y >= 0, y, 0.01 * y)
        o_ref[0, p] = y.astype(o_ref.dtype)


def upblock_forward(x_nchw, weight_oihw, bias=None):
    """Pallas UpBlock forward. x_nchw: (N, Cin, H, W) -> (N, Cout, 2H, 2W).

    `bias` is accepted for API parity with nn.Conv2d but is a mathematical
    no-op: InstanceNorm2d(affine=False) removes any per-channel constant.
    """
    del bias  # cancels exactly under the mean subtraction of InstanceNorm2d
    N, Cin, H, W = x_nchw.shape
    Cout = weight_oihw.shape[0]
    HW = H * W

    # Effective 2x2 sub-pixel weights: sel[parity, tap, orig_tap] selects which
    # original 3x3 taps collapse onto each 2x2 footprint position under 2x
    # nearest upsampling (same pattern for rows and columns).
    sel = jnp.array([[[1.0, 0.0, 0.0], [0.0, 1.0, 1.0]],
                     [[1.0, 1.0, 0.0], [0.0, 0.0, 1.0]]], weight_oihw.dtype)
    w_eff = jnp.einsum("pay,qbx,oiyx->pqaboi", sel, sel, weight_oihw)
    w_eff = w_eff.reshape(16, Cout, Cin)              # ((py, px, a, b) major)

    x_flat = x_nchw.reshape(N, Cin, HW)               # free contiguous reshape

    kernel = functools.partial(_upblock_kernel, H=H, W=W)
    out = pl.pallas_call(
        kernel,
        out_shape=jax.ShapeDtypeStruct((N, 4, Cout, HW), x_nchw.dtype),
        grid_spec=pltpu.PrefetchScalarGridSpec(
            num_scalar_prefetch=0,
            grid=(N,),
            in_specs=[
                pl.BlockSpec((1, Cin, HW), lambda n: (n, 0, 0)),
                pl.BlockSpec((16, Cout, Cin), lambda n: (0, 0, 0)),
            ],
            out_specs=pl.BlockSpec((1, 4, Cout, HW), lambda n: (n, 0, 0, 0)),
        ),
        compiler_params=pltpu.CompilerParams(
            dimension_semantics=("parallel",),
            vmem_limit_bytes=48 * 1024 * 1024),
    )(x_flat, w_eff)

    # Interleave the 4 parity planes back into NCHW:
    # (N,4,Cout,HW) -> (N,2py,2px,Cout,H,W) -> (N,Cout,H,2py,W,2px) -> NCHW.
    out = out.reshape(N, 2, 2, Cout, H, W)
    out = jnp.transpose(out, (0, 3, 4, 1, 5, 2))
    return out.reshape(N, Cout, 2 * H, 2 * W)


def _reference_forward(x_nchw, weight_oihw, bias):
    """Pure-JAX reference mirroring the PyTorch module (with bias)."""
    x = jnp.transpose(x_nchw, (0, 2, 3, 1))
    x = jnp.repeat(jnp.repeat(x, 2, axis=1), 2, axis=2)
    xp = jnp.pad(x, ((0, 0), (1, 1), (1, 1), (0, 0)), mode="reflect")
    w = jnp.transpose(weight_oihw, (2, 3, 1, 0))
    y = lax.conv_general_dilated(
        xp, w, window_strides=(1, 1), padding="VALID",
        dimension_numbers=("NHWC", "HWIO", "NHWC"))
    y = y + bias[None, None, None, :]
    mean = jnp.mean(y, axis=(1, 2), keepdims=True)
    var = jnp.mean((y - mean) ** 2, axis=(1, 2), keepdims=True)
    y = (y - mean) * lax.rsqrt(var + 1e-5)
    y = jnp.where(y >= 0, y, 0.01 * y)
    return jnp.transpose(y, (0, 3, 1, 2))


if __name__ == "__main__":
    key = jax.random.PRNGKey(0)
    k_x, k_w, k_b = jax.random.split(key, 3)

    N, C_IN, C_OUT, H, W = 2, 4, 8, 16, 16

    x = jax.random.normal(k_x, (N, C_IN, H, W), jnp.float32)
    # Conv2d params: weight (Cout, Cin, 3, 3), bias (Cout,).
    fan_in = C_IN * 3 * 3
    bound = 1.0 / (fan_in ** 0.5)
    weight = jax.random.uniform(k_w, (C_OUT, C_IN, 3, 3), jnp.float32,
                                minval=-bound, maxval=bound)
    bias = jax.random.uniform(k_b, (C_OUT,), jnp.float32,
                              minval=-bound, maxval=bound)

    out = upblock_forward(x, weight, bias)
    out = jax.block_until_ready(out)

    ref = _reference_forward(x, weight, bias)
    assert out.shape == (N, C_OUT, 2 * H, 2 * W)
    assert jnp.allclose(out, ref, atol=1e-4, rtol=1e-4)

    print("KERNEL_OK")
</pallas_src>

<mosaic_0001>
module attributes {stable_mosaic.version = 11 : i64} {
  func.func @_upblock_kernel(%arg0: i32, %arg1: memref<1x4x256xf32, #tpu.memory_space<vmem>>, %arg2: memref<16x8x4xf32, #tpu.memory_space<vmem>>, %arg3: memref<1x4x8x256xf32, #tpu.memory_space<vmem>>) attributes {dimension_semantics = [#tpu.dimension_semantics<parallel>], iteration_bounds = array<i64: 2>, scalar_prefetch = 0 : i64, scratch_operands = 0 : i64, tpu.core_type = #tpu.core_type<tc>, window_params = [{transform_indices = @transform_0, window_bounds = array<i64: 1, 4, 256>}, {pipeline_mode = #tpu.pipeline_mode<synchronous>, transform_indices = @transform_1, window_bounds = array<i64: 16, 8, 4>}, {transform_indices = @transform_2, window_bounds = array<i64: 1, 4, 8, 256>}]} {
    %c0 = arith.constant 0 : index
    %c0_0 = arith.constant 0 : index
    %c0_1 = arith.constant 0 : index
    %0 = vector.load %arg1[%c0, %c0_0, %c0_1] : memref<1x4x256xf32, #tpu.memory_space<vmem>>, vector<1x4x256xf32>
    %1 = vector.shape_cast %0 : vector<1x4x256xf32> to vector<4x256xf32>
    %2 = tpu.iota {dimensions = array<i32: 1>} : vector<1x256xi32>
    %c16_i32 = arith.constant 16 : i32
    %c0_i32 = arith.constant 0 : i32
    %3 = arith.cmpi eq, %c16_i32, %c0_i32 : i32
    %c1_i32 = arith.constant 1 : i32
    %4 = arith.select %3, %c1_i32, %c16_i32 : i32
    %5 = vector.broadcast %4 : i32 to vector<1x256xi32>
    %6 = arith.remsi %2, %5 : vector<1x256xi32>
    %c0_i32_2 = arith.constant 0 : i32
    %7 = vector.broadcast %c0_i32_2 : i32 to vector<1x256xi32>
    %8 = arith.cmpi ne, %6, %7 : vector<1x256xi32>
    %c0_i32_3 = arith.constant 0 : i32
    %9 = vector.broadcast %c0_i32_3 : i32 to vector<1x256xi32>
    %10 = arith.cmpi slt, %6, %9 : vector<1x256xi32>
    %c0_i32_4 = arith.constant 0 : i32
    %11 = arith.cmpi slt, %4, %c0_i32_4 : i32
    %12 = vector.broadcast %11 : i1 to vector<1x256xi1>
    %13 = vector.broadcast %12 : vector<1x256xi1> to vector<1x256xi1>
    %14 = arith.xori %10, %13 : vector<1x256xi1>
    %15 = arith.andi %14, %8 : vector<1x256xi1>
    %16 = vector.broadcast %4 : i32 to vector<1x256xi32>
    %17 = arith.addi %6, %16 : vector<1x256xi32>
    %18 = arith.select %15, %17, %6 : vector<1x256xi1>, vector<1x256xi32>
    %c0_i32_5 = arith.constant 0 : i32
    %19 = vector.broadcast %c0_i32_5 : i32 to vector<1x256xi32>
    %20 = arith.cmpi eq, %18, %19 : vector<1x256xi32>
    %c15_i32 = arith.constant 15 : i32
    %21 = vector.broadcast %c15_i32 : i32 to vector<1x256xi32>
    %22 = arith.cmpi eq, %18, %21 : vector<1x256xi32>
    %c16_i32_6 = arith.constant 16 : i32
    %23 = vector.broadcast %c16_i32_6 : i32 to vector<1x256xi32>
    %24 = arith.cmpi slt, %2, %23 : vector<1x256xi32>
    %c240_i32 = arith.constant 240 : i32
    %25 = vector.broadcast %c240_i32 : i32 to vector<1x256xi32>
    %26 = arith.cmpi sge, %2, %25 : vector<1x256xi32>
    %27 = vector.extract_strided_slice %1 {offsets = [0, 255], sizes = [4, 1], strides = [1, 1]} : vector<4x256xf32> to vector<4x1xf32>
    %28 = vector.extract_strided_slice %1 {offsets = [0, 0], sizes = [4, 255], strides = [1, 1]} : vector<4x256xf32> to vector<4x255xf32>
    %29 = tpu.concatenate %27, %28 in 1 : vector<4x1xf32>, vector<4x255xf32> -> vector<4x256xf32>
    %30 = vector.shape_cast %20 : vector<1x256xi1> to vector<1x256xi1>
    %31 = vector.broadcast %30 : vector<1x256xi1> to vector<4x256xi1>
    %32 = arith.select %31, %1, %29 : vector<4x256xi1>, vector<4x256xf32>
    %33 = vector.extract_strided_slice %1 {offsets = [0, 1], sizes = [4, 255], strides = [1, 1]} : vector<4x256xf32> to vector<4x255xf32>
    %34 = vector.extract_strided_slice %1 {offsets = [0, 0], sizes = [4, 1], strides = [1, 1]} : vector<4x256xf32> to vector<4x1xf32>
    %35 = tpu.concatenate %33, %34 in 1 : vector<4x255xf32>, vector<4x1xf32> -> vector<4x256xf32>
    %36 = vector.shape_cast %22 : vector<1x256xi1> to vector<1x256xi1>
    %37 = vector.broadcast %36 : vector<1x256xi1> to vector<4x256xi1>
    %38 = arith.select %37, %1, %35 : vector<4x256xi1>, vector<4x256xf32>
    %cst = arith.constant 0.000000e+00 : f32
    %39 = vector.broadcast %cst : f32 to vector<8x256xf32>
    %cst_7 = arith.constant 0.000000e+00 : f32
    %40 = vector.broadcast %cst_7 : f32 to vector<8x256xf32>
    %cst_8 = arith.constant 0.000000e+00 : f32
    %41 = vector.broadcast %cst_8 : f32 to vector<8x256xf32>
    %cst_9 = arith.constant 0.000000e+00 : f32
    %42 = vector.broadcast %cst_9 : f32 to vector<8x256xf32>
    %43 = vector.extract_strided_slice %32 {offsets = [0, 240], sizes = [4, 16], strides = [1, 1]} : vector<4x256xf32> to vector<4x16xf32>
    %44 = vector.extract_strided_slice %32 {offsets = [0, 0], sizes = [4, 240], strides = [1, 1]} : vector<4x256xf32> to vector<4x240xf32>
    %45 = tpu.concatenate %43, %44 in 1 : vector<4x16xf32>, vector<4x240xf32> -> vector<4x256xf32>
    %46 = vector.shape_cast %24 : vector<1x256xi1> to vector<1x256xi1>
    %47 = vector.broadcast %46 : vector<1x256xi1> to vector<4x256xi1>
    %48 = arith.select %47, %32, %45 : vector<4x256xi1>, vector<4x256xf32>
    %c0_10 = arith.constant 0 : index
    %c0_11 = arith.constant 0 : index
    %c0_12 = arith.constant 0 : index
    %49 = vector.load %arg2[%c0_10, %c0_11, %c0_12] : memref<16x8x4xf32, #tpu.memory_space<vmem>>, vector<1x8x4xf32>
    %50 = vector.shape_cast %49 : vector<1x8x4xf32> to vector<8x4xf32>
    %cst_13 = arith.constant dense<0.000000e+00> : vector<8x256xf32>
    %51 = tpu.matmul %50, %48, %cst_13 {dimension_numbers = #tpu.dot_dimension_numbers<[1], [0], [0], [1], [0, 0, 1, 1], [], []>} : vector<8x4xf32>, vector<4x256xf32>, vector<8x256xf32> -> vector<8x256xf32>
    %52 = arith.addf %39, %51 : vector<8x256xf32>
    %53 = vector.extract_strided_slice %1 {offsets = [0, 240], sizes = [4, 16], strides = [1, 1]} : vector<4x256xf32> to vector<4x16xf32>
    %54 = vector.extract_strided_slice %1 {offsets = [0, 0], sizes = [4, 240], strides = [1, 1]} : vector<4x256xf32> to vector<4x240xf32>
    %55 = tpu.concatenate %53, %54 in 1 : vector<4x16xf32>, vector<4x240xf32> -> vector<4x256xf32>
    %56 = vector.shape_cast %24 : vector<1x256xi1> to vector<1x256xi1>
    %57 = vector.broadcast %56 : vector<1x256xi1> to vector<4x256xi1>
    %58 = arith.select %57, %1, %55 : vector<4x256xi1>, vector<4x256xf32>
    %c1 = arith.constant 1 : index
    %c0_14 = arith.constant 0 : index
    %c0_15 = arith.constant 0 : index
    %59 = vector.load %arg2[%c1, %c0_14, %c0_15] : memref<16x8x4xf32, #tpu.memory_space<vmem>>, vector<1x8x4xf32>
    %60 = vector.shape_cast %59 : vector<1x8x4xf32> to vector<8x4xf32>
    %cst_16 = arith.constant dense<0.000000e+00> : vector<8x256xf32>
    %61 = tpu.matmul %60, %58, %cst_16 {dimension_numbers = #tpu.dot_dimension_numbers<[1], [0], [0], [1], [0, 0, 1, 1], [], []>} : vector<8x4xf32>, vector<4x256xf32>, vector<8x256xf32> -> vector<8x256xf32>
    %62 = arith.addf %52, %61 : vector<8x256xf32>
    %c4 = arith.constant 4 : index
    %c0_17 = arith.constant 0 : index
    %c0_18 = arith.constant 0 : index
    %63 = vector.load %arg2[%c4, %c0_17, %c0_18] : memref<16x8x4xf32, #tpu.memory_space<vmem>>, vector<1x8x4xf32>
    %64 = vector.shape_cast %63 : vector<1x8x4xf32> to vector<8x4xf32>
    %cst_19 = arith.constant dense<0.000000e+00> : vector<8x256xf32>
    %65 = tpu.matmul %64, %58, %cst_19 {dimension_numbers = #tpu.dot_dimension_numbers<[1], [0], [0], [1], [0, 0, 1, 1], [], []>} : vector<8x4xf32>, vector<4x256xf32>, vector<8x256xf32> -> vector<8x256xf32>
    %66 = arith.addf %40, %65 : vector<8x256xf32>
    %67 = vector.extract_strided_slice %38 {offsets = [0, 240], sizes = [4, 16], strides = [1, 1]} : vector<4x256xf32> to vector<4x16xf32>
    %68 = vector.extract_strided_slice %38 {offsets = [0, 0], sizes = [4, 240], strides = [1, 1]} : vector<4x256xf32> to vector<4x240xf32>
    %69 = tpu.concatenate %67, %68 in 1 : vector<4x16xf32>, vector<4x240xf32> -> vector<4x256xf32>
    %70 = vector.shape_cast %24 : vector<1x256xi1> to vector<1x256xi1>
    %71 = vector.broadcast %70 : vector<1x256xi1> to vector<4x256xi1>
    %72 = arith.select %71, %38, %69 : vector<4x256xi1>, vector<4x256xf32>
    %c5 = arith.constant 5 : index
    %c0_20 = arith.constant 0 : index
    %c0_21 = arith.constant 0 : index
    %73 = vector.load %arg2[%c5, %c0_20, %c0_21] : memref<16x8x4xf32, #tpu.memory_space<vmem>>, vector<1x8x4xf32>
    %74 = vector.shape_cast %73 : vector<1x8x4xf32> to vector<8x4xf32>
    %cst_22 = arith.constant dense<0.000000e+00> : vector<8x256xf32>
    %75 = tpu.matmul %74, %72, %cst_22 {dimension_numbers = #tpu.dot_dimension_numbers<[1], [0], [0], [1], [0, 0, 1, 1], [], []>} : vector<8x4xf32>, vector<4x256xf32>, vector<8x256xf32> -> vector<8x256xf32>
    %76 = arith.addf %66, %75 : vector<8x256xf32>
    %c2 = arith.constant 2 : index
    %c0_23 = arith.constant 0 : index
    %c0_24 = arith.constant 0 : index
    %77 = vector.load %arg2[%c2, %c0_23, %c0_24] : memref<16x8x4xf32, #tpu.memory_space<vmem>>, vector<1x8x4xf32>
    %78 = vector.shape_cast %77 : vector<1x8x4xf32> to vector<8x4xf32>
    %cst_25 = arith.constant dense<0.000000e+00> : vector<8x256xf32>
    %79 = tpu.matmul %78, %32, %cst_25 {dimension_numbers = #tpu.dot_dimension_numbers<[1], [0], [0], [1], [0, 0, 1, 1], [], []>} : vector<8x4xf32>, vector<4x256xf32>, vector<8x256xf32> -> vector<8x256xf32>
    %80 = arith.addf %62, %79 : vector<8x256xf32>
    %c8 = arith.constant 8 : index
    %c0_26 = arith.constant 0 : index
    %c0_27 = arith.constant 0 : index
    %81 = vector.load %arg2[%c8, %c0_26, %c0_27] : memref<16x8x4xf32, #tpu.memory_space<vmem>>, vector<1x8x4xf32>
    %82 = vector.shape_cast %81 : vector<1x8x4xf32> to vector<8x4xf32>
    %cst_28 = arith.constant dense<0.000000e+00> : vector<8x256xf32>
    %83 = tpu.matmul %82, %32, %cst_28 {dimension_numbers = #tpu.dot_dimension_numbers<[1], [0], [0], [1], [0, 0, 1, 1], [], []>} : vector<8x4xf32>, vector<4x256xf32>, vector<8x256xf32> -> vector<8x256xf32>
    %84 = arith.addf %41, %83 : vector<8x256xf32>
    %c3 = arith.constant 3 : index
    %c0_29 = arith.constant 0 : index
    %c0_30 = arith.constant 0 : index
    %85 = vector.load %arg2[%c3, %c0_29, %c0_30] : memref<16x8x4xf32, #tpu.memory_space<vmem>>, vector<1x8x4xf32>
    %86 = vector.shape_cast %85 : vector<1x8x4xf32> to vector<8x4xf32>
    %cst_31 = arith.constant dense<0.000000e+00> : vector<8x256xf32>
    %87 = tpu.matmul %86, %1, %cst_31 {dimension_numbers = #tpu.dot_dimension_numbers<[1], [0], [0], [1], [0, 0, 1, 1], [], []>} : vector<8x4xf32>, vector<4x256xf32>, vector<8x256xf32> -> vector<8x256xf32>
    %88 = arith.addf %80, %87 : vector<8x256xf32>
    %c6 = arith.constant 6 : index
    %c0_32 = arith.constant 0 : index
    %c0_33 = arith.constant 0 : index
    %89 = vector.load %arg2[%c6, %c0_32, %c0_33] : memref<16x8x4xf32, #tpu.memory_space<vmem>>, vector<1x8x4xf32>
    %90 = vector.shape_cast %89 : vector<1x8x4xf32> to vector<8x4xf32>
    %cst_34 = arith.constant dense<0.000000e+00> : vector<8x256xf32>
    %91 = tpu.matmul %90, %1, %cst_34 {dimension_numbers = #tpu.dot_dimension_numbers<[1], [0], [0], [1], [0, 0, 1, 1], [], []>} : vector<8x4xf32>, vector<4x256xf32>, vector<8x256xf32> -> vector<8x256xf32>
    %92 = arith.addf %76, %91 : vector<8x256xf32>
    %c9 = arith.constant 9 : index
    %c0_35 = arith.constant 0 : index
    %c0_36 = arith.constant 0 : index
    %93 = vector.load %arg2[%c9, %c0_35, %c0_36] : memref<16x8x4xf32, #tpu.memory_space<vmem>>, vector<1x8x4xf32>
    %94 = vector.shape_cast %93 : vector<1x8x4xf32> to vector<8x4xf32>
    %cst_37 = arith.constant dense<0.000000e+00> : vector<8x256xf32>
    %95 = tpu.matmul %94, %1, %cst_37 {dimension_numbers = #tpu.dot_dimension_numbers<[1], [0], [0], [1], [0, 0, 1, 1], [], []>} : vector<8x4xf32>, vector<4x256xf32>, vector<8x256xf32> -> vector<8x256xf32>
    %96 = arith.addf %84, %95 : vector<8x256xf32>
    %c12 = arith.constant 12 : index
    %c0_38 = arith.constant 0 : index
    %c0_39 = arith.constant 0 : index
    %97 = vector.load %arg2[%c12, %c0_38, %c0_39] : memref<16x8x4xf32, #tpu.memory_space<vmem>>, vector<1x8x4xf32>
    %98 = vector.shape_cast %97 : vector<1x8x4xf32> to vector<8x4xf32>
    %cst_40 = arith.constant dense<0.000000e+00> : vector<8x256xf32>
    %99 = tpu.matmul %98, %1, %cst_40 {dimension_numbers = #tpu.dot_dimension_numbers<[1], [0], [0], [1], [0, 0, 1, 1], [], []>} : vector<8x4xf32>, vector<4x256xf32>, vector<8x256xf32> -> vector<8x256xf32>
    %100 = arith.addf %42, %99 : vector<8x256xf32>
    %c7 = arith.constant 7 : index
    %c0_41 = arith.constant 0 : index
    %c0_42 = arith.constant 0 : index
    %101 = vector.load %arg2[%c7, %c0_41, %c0_42] : memref<16x8x4xf32, #tpu.memory_space<vmem>>, vector<1x8x4xf32>
    %102 = vector.shape_cast %101 : vector<1x8x4xf32> to vector<8x4xf32>
    %cst_43 = arith.constant dense<0.000000e+00> : vector<8x256xf32>
    %103 = tpu.matmul %102, %38, %cst_43 {dimension_numbers = #tpu.dot_dimension_numbers<[1], [0], [0], [1], [0, 0, 1, 1], [], []>} : vector<8x4xf32>, vector<4x256xf32>, vector<8x256xf32> -> vector<8x256xf32>
    %104 = arith.addf %92, %103 : vector<8x256xf32>
    %c13 = arith.constant 13 : index
    %c0_44 = arith.constant 0 : index
    %c0_45 = arith.constant 0 : index
    %105 = vector.load %arg2[%c13, %c0_44, %c0_45] : memref<16x8x4xf32, #tpu.memory_space<vmem>>, vector<1x8x4xf32>
    %106 = vector.shape_cast %105 : vector<1x8x4xf32> to vector<8x4xf32>
    %cst_46 = arith.constant dense<0.000000e+00> : vector<8x256xf32>
    %107 = tpu.matmul %106, %38, %cst_46 {dimension_numbers = #tpu.dot_dimension_numbers<[1], [0], [0], [1], [0, 0, 1, 1], [], []>} : vector<8x4xf32>, vector<4x256xf32>, vector<8x256xf32> -> vector<8x256xf32>
    %108 = arith.addf %100, %107 : vector<8x256xf32>
    %109 = vector.extract_strided_slice %32 {offsets = [0, 16], sizes = [4, 240], strides = [1, 1]} : vector<4x256xf32> to vector<4x240xf32>
    %110 = vector.extract_strided_slice %32 {offsets = [0, 0], sizes = [4, 16], strides = [1, 1]} : vector<4x256xf32> to vector<4x16xf32>
    %111 = tpu.concatenate %109, %110 in 1 : vector<4x240xf32>, vector<4x16xf32> -> vector<4x256xf32>
    %112 = vector.shape_cast %26 : vector<1x256xi1> to vector<1x256xi1>
    %113 = vector.broadcast %112 : vector<1x256xi1> to vector<4x256xi1>
    %114 = arith.select %113, %32, %111 : vector<4x256xi1>, vector<4x256xf32>
    %c10 = arith.constant 10 : index
    %c0_47 = arith.constant 0 : index
    %c0_48 = arith.constant 0 : index
    %115 = vector.load %arg2[%c10, %c0_47, %c0_48] : memref<16x8x4xf32, #tpu.memory_space<vmem>>, vector<1x8x4xf32>
    %116 = vector.shape_cast %115 : vector<1x8x4xf32> to vector<8x4xf32>
    %cst_49 = arith.constant dense<0.000000e+00> : vector<8x256xf32>
    %117 = tpu.matmul %116, %114, %cst_49 {dimension_numbers = #tpu.dot_dimension_numbers<[1], [0], [0], [1], [0, 0, 1, 1], [], []>} : vector<8x4xf32>, vector<4x256xf32>, vector<8x256xf32> -> vector<8x256xf32>
    %118 = arith.addf %96, %117 : vector<8x256xf32>
    %119 = vector.extract_strided_slice %1 {offsets = [0, 16], sizes = [4, 240], strides = [1, 1]} : vector<4x256xf32> to vector<4x240xf32>
    %120 = vector.extract_strided_slice %1 {offsets = [0, 0], sizes = [4, 16], strides = [1, 1]} : vector<4x256xf32> to vector<4x16xf32>
    %121 = tpu.concatenate %119, %120 in 1 : vector<4x240xf32>, vector<4x16xf32> -> vector<4x256xf32>
    %122 = vector.shape_cast %26 : vector<1x256xi1> to vector<1x256xi1>
    %123 = vector.broadcast %122 : vector<1x256xi1> to vector<4x256xi1>
    %124 = arith.select %123, %1, %121 : vector<4x256xi1>, vector<4x256xf32>
    %c11 = arith.constant 11 : index
    %c0_50 = arith.constant 0 : index
    %c0_51 = arith.constant 0 : index
    %125 = vector.load %arg2[%c11, %c0_50, %c0_51] : memref<16x8x4xf32, #tpu.memory_space<vmem>>, vector<1x8x4xf32>
    %126 = vector.shape_cast %125 : vector<1x8x4xf32> to vector<8x4xf32>
    %cst_52 = arith.constant dense<0.000000e+00> : vector<8x256xf32>
    %127 = tpu.matmul %126, %124, %cst_52 {dimension_numbers = #tpu.dot_dimension_numbers<[1], [0], [0], [1], [0, 0, 1, 1], [], []>} : vector<8x4xf32>, vector<4x256xf32>, vector<8x256xf32> -> vector<8x256xf32>
    %128 = arith.addf %118, %127 : vector<8x256xf32>
    %c14 = arith.constant 14 : index
    %c0_53 = arith.constant 0 : index
    %c0_54 = arith.constant 0 : index
    %129 = vector.load %arg2[%c14, %c0_53, %c0_54] : memref<16x8x4xf32, #tpu.memory_space<vmem>>, vector<1x8x4xf32>
    %130 = vector.shape_cast %129 : vector<1x8x4xf32> to vector<8x4xf32>
    %cst_55 = arith.constant dense<0.000000e+00> : vector<8x256xf32>
    %131 = tpu.matmul %130, %124, %cst_55 {dimension_numbers = #tpu.dot_dimension_numbers<[1], [0], [0], [1], [0, 0, 1, 1], [], []>} : vector<8x4xf32>, vector<4x256xf32>, vector<8x256xf32> -> vector<8x256xf32>
    %132 = arith.addf %108, %131 : vector<8x256xf32>
    %133 = vector.extract_strided_slice %38 {offsets = [0, 16], sizes = [4, 240], strides = [1, 1]} : vector<4x256xf32> to vector<4x240xf32>
    %134 = vector.extract_strided_slice %38 {offsets = [0, 0], sizes = [4, 16], strides = [1, 1]} : vector<4x256xf32> to vector<4x16xf32>
    %135 = tpu.concatenate %133, %134 in 1 : vector<4x240xf32>, vector<4x16xf32> -> vector<4x256xf32>
    %136 = vector.shape_cast %26 : vector<1x256xi1> to vector<1x256xi1>
    %137 = vector.broadcast %136 : vector<1x256xi1> to vector<4x256xi1>
    %138 = arith.select %137, %38, %135 : vector<4x256xi1>, vector<4x256xf32>
    %c15 = arith.constant 15 : index
    %c0_56 = arith.constant 0 : index
    %c0_57 = arith.constant 0 : index
    %139 = vector.load %arg2[%c15, %c0_56, %c0_57] : memref<16x8x4xf32, #tpu.memory_space<vmem>>, vector<1x8x4xf32>
    %140 = vector.shape_cast %139 : vector<1x8x4xf32> to vector<8x4xf32>
    %cst_58 = arith.constant dense<0.000000e+00> : vector<8x256xf32>
    %141 = tpu.matmul %140, %138, %cst_58 {dimension_numbers = #tpu.dot_dimension_numbers<[1], [0], [0], [1], [0, 0, 1, 1], [], []>} : vector<8x4xf32>, vector<4x256xf32>, vector<8x256xf32> -> vector<8x256xf32>
    %142 = arith.addf %132, %141 : vector<8x256xf32>
    %cst_59 = arith.constant 0.000000e+00 : f32
    %143 = vector.broadcast %cst_59 : f32 to vector<8x1xf32>
    %cst_60 = arith.constant 0.000000e+00 : f32
    %144 = vector.broadcast %cst_60 : f32 to vector<8x1xf32>
    %cst_61 = arith.constant dense<0.000000e+00> : vector<8xf32>
    %145 = vector.multi_reduction <add>, %88, %cst_61 [1] : vector<8x256xf32> to vector<8xf32>
    %146 = vector.shape_cast %145 : vector<8xf32> to vector<8x1xf32>
    %147 = arith.addf %143, %146 : vector<8x1xf32>
    %148 = arith.mulf %88, %88 : vector<8x256xf32>
    %cst_62 = arith.constant dense<0.000000e+00> : vector<8xf32>
    %149 = vector.multi_reduction <add>, %148, %cst_62 [1] : vector<8x256xf32> to vector<8xf32>
    %150 = vector.shape_cast %149 : vector<8xf32> to vector<8x1xf32>
    %151 = arith.addf %144, %150 : vector<8x1xf32>
    %cst_63 = arith.constant dense<0.000000e+00> : vector<8xf32>
    %152 = vector.multi_reduction <add>, %104, %cst_63 [1] : vector<8x256xf32> to vector<8xf32>
    %153 = vector.shape_cast %152 : vector<8xf32> to vector<8x1xf32>
    %154 = arith.addf %147, %153 : vector<8x1xf32>
    %155 = arith.mulf %104, %104 : vector<8x256xf32>
    %cst_64 = arith.constant dense<0.000000e+00> : vector<8xf32>
    %156 = vector.multi_reduction <add>, %155, %cst_64 [1] : vector<8x256xf32> to vector<8xf32>
    %157 = vector.shape_cast %156 : vector<8xf32> to vector<8x1xf32>
    %158 = arith.addf %151, %157 : vector<8x1xf32>
    %cst_65 = arith.constant dense<0.000000e+00> : vector<8xf32>
    %159 = vector.multi_reduction <add>, %128, %cst_65 [1] : vector<8x256xf32> to vector<8xf32>
    %160 = vector.shape_cast %159 : vector<8xf32> to vector<8x1xf32>
    %161 = arith.addf %154, %160 : vector<8x1xf32>
    %162 = arith.mulf %128, %128 : vector<8x256xf32>
    %cst_66 = arith.constant dense<0.000000e+00> : vector<8xf32>
    %163 = vector.multi_reduction <add>, %162, %cst_66 [1] : vector<8x256xf32> to vector<8xf32>
    %164 = vector.shape_cast %163 : vector<8xf32> to vector<8x1xf32>
    %165 = arith.addf %158, %164 : vector<8x1xf32>
    %cst_67 = arith.constant dense<0.000000e+00> : vector<8xf32>
    %166 = vector.multi_reduction <add>, %142, %cst_67 [1] : vector<8x256xf32> to vector<8xf32>
    %167 = vector.shape_cast %166 : vector<8xf32> to vector<8x1xf32>
    %168 = arith.addf %161, %167 : vector<8x1xf32>
    %169 = arith.mulf %142, %142 : vector<8x256xf32>
    %cst_68 = arith.constant dense<0.000000e+00> : vector<8xf32>
    %170 = vector.multi_reduction <add>, %169, %cst_68 [1] : vector<8x256xf32> to vector<8xf32>
    %171 = vector.shape_cast %170 : vector<8xf32> to vector<8x1xf32>
    %172 = arith.addf %165, %171 : vector<8x1xf32>
    %cst_69 = arith.constant 9.765625E-4 : f32
    %173 = vector.broadcast %cst_69 : f32 to vector<8x1xf32>
    %174 = arith.mulf %168, %173 : vector<8x1xf32>
    %cst_70 = arith.constant 9.765625E-4 : f32
    %175 = vector.broadcast %cst_70 : f32 to vector<8x1xf32>
    %176 = arith.mulf %172, %175 : vector<8x1xf32>
    %177 = arith.mulf %174, %174 : vector<8x1xf32>
    %178 = arith.subf %176, %177 : vector<8x1xf32>
    %cst_71 = arith.constant 9.99999974E-6 : f32
    %179 = vector.broadcast %cst_71 : f32 to vector<8x1xf32>
    %180 = arith.addf %178, %179 : vector<8x1xf32>
    %181 = math.rsqrt %180 : vector<8x1xf32>
    %182 = vector.broadcast %174 : vector<8x1xf32> to vector<8x256xf32>
    %183 = arith.subf %88, %182 : vector<8x256xf32>
    %184 = vector.broadcast %181 : vector<8x1xf32> to vector<8x256xf32>
    %185 = arith.mulf %183, %184 : vector<8x256xf32>
    %cst_72 = arith.constant 0.000000e+00 : f32
    %186 = vector.broadcast %cst_72 : f32 to vector<8x256xf32>
    %187 = arith.cmpf oge, %185, %186 : vector<8x256xf32>
    %cst_73 = arith.constant 0.00999999977 : f32
    %188 = vector.broadcast %cst_73 : f32 to vector<8x256xf32>
    %189 = arith.mulf %188, %185 : vector<8x256xf32>
    %190 = arith.select %187, %185, %189 : vector<8x256xi1>, vector<8x256xf32>
    %c0_74 = arith.constant 0 : index
    %c0_75 = arith.constant 0 : index
    %c0_76 = arith.constant 0 : index
    %c0_77 = arith.constant 0 : index
    %191 = vector.load %arg3[%c0_74, %c0_75, %c0_76, %c0_77] : memref<1x4x8x256xf32, #tpu.memory_space<vmem>>, vector<1x1x8x256xf32>
    %192 = vector.shape_cast %191 : vector<1x1x8x256xf32> to vector<8x256xf32>
    %193 = vector.shape_cast %190 : vector<8x256xf32> to vector<1x1x8x256xf32>
    tpu.vector_store %arg3[%c0_74, %c0_75, %c0_76, %c0_77], %193 {strides = array<i32>} : memref<1x4x8x256xf32, #tpu.memory_space<vmem>>, vector<1x1x8x256xf32>,
    %194 = vector.broadcast %174 : vector<8x1xf32> to vector<8x256xf32>
    %195 = arith.subf %104, %194 : vector<8x256xf32>
    %196 = vector.broadcast %181 : vector<8x1xf32> to vector<8x256xf32>
    %197 = arith.mulf %195, %196 : vector<8x256xf32>
    %cst_78 = arith.constant 0.000000e+00 : f32
    %198 = vector.broadcast %cst_78 : f32 to vector<8x256xf32>
    %199 = arith.cmpf oge, %197, %198 : vector<8x256xf32>
    %cst_79 = arith.constant 0.00999999977 : f32
    %200 = vector.broadcast %cst_79 : f32 to vector<8x256xf32>
    %201 = arith.mulf %200, %197 : vector<8x256xf32>
    %202 = arith.select %199, %197, %201 : vector<8x256xi1>, vector<8x256xf32>
    %c0_80 = arith.constant 0 : index
    %c1_81 = arith.constant 1 : index
    %c0_82 = arith.constant 0 : index
    %c0_83 = arith.constant 0 : index
    %203 = vector.load %arg3[%c0_80, %c1_81, %c0_82, %c0_83] : memref<1x4x8x256xf32, #tpu.memory_space<vmem>>, vector<1x1x8x256xf32>
    %204 = vector.shape_cast %203 : vector<1x1x8x256xf32> to vector<8x256xf32>
    %205 = vector.shape_cast %202 : vector<8x256xf32> to vector<1x1x8x256xf32>
    tpu.vector_store %arg3[%c0_80, %c1_81, %c0_82, %c0_83], %205 {strides = array<i32>} : memref<1x4x8x256xf32, #tpu.memory_space<vmem>>, vector<1x1x8x256xf32>,
    %206 = vector.broadcast %174 : vector<8x1xf32> to vector<8x256xf32>
    %207 = arith.subf %128, %206 : vector<8x256xf32>
    %208 = vector.broadcast %181 : vector<8x1xf32> to vector<8x256xf32>
    %209 = arith.mulf %207, %208 : vector<8x256xf32>
    %cst_84 = arith.constant 0.000000e+00 : f32
    %210 = vector.broadcast %cst_84 : f32 to vector<8x256xf32>
    %211 = arith.cmpf oge, %209, %210 : vector<8x256xf32>
    %cst_85 = arith.constant 0.00999999977 : f32
    %212 = vector.broadcast %cst_85 : f32 to vector<8x256xf32>
    %213 = arith.mulf %212, %209 : vector<8x256xf32>
    %214 = arith.select %211, %209, %213 : vector<8x256xi1>, vector<8x256xf32>
    %c0_86 = arith.constant 0 : index
    %c2_87 = arith.constant 2 : index
    %c0_88 = arith.constant 0 : index
    %c0_89 = arith.constant 0 : index
    %215 = vector.load %arg3[%c0_86, %c2_87, %c0_88, %c0_89] : memref<1x4x8x256xf32, #tpu.memory_space<vmem>>, vector<1x1x8x256xf32>
    %216 = vector.shape_cast %215 : vector<1x1x8x256xf32> to vector<8x256xf32>
    %217 = vector.shape_cast %214 : vector<8x256xf32> to vector<1x1x8x256xf32>
    tpu.vector_store %arg3[%c0_86, %c2_87, %c0_88, %c0_89], %217 {strides = array<i32>} : memref<1x4x8x256xf32, #tpu.memory_space<vmem>>, vector<1x1x8x256xf32>,
    %218 = vector.broadcast %174 : vector<8x1xf32> to vector<8x256xf32>
    %219 = arith.subf %142, %218 : vector<8x256xf32>
    %220 = vector.broadcast %181 : vector<8x1xf32> to vector<8x256xf32>
    %221 = arith.mulf %219, %220 : vector<8x256xf32>
    %cst_90 = arith.constant 0.000000e+00 : f32
    %222 = vector.broadcast %cst_90 : f32 to vector<8x256xf32>
    %223 = arith.cmpf oge, %221, %222 : vector<8x256xf32>
    %cst_91 = arith.constant 0.00999999977 : f32
    %224 = vector.broadcast %cst_91 : f32 to vector<8x256xf32>
    %225 = arith.mulf %224, %221 : vector<8x256xf32>
    %226 = arith.select %223, %221, %225 : vector<8x256xi1>, vector<8x256xf32>
    %c0_92 = arith.constant 0 : index
    %c3_93 = arith.constant 3 : index
    %c0_94 = arith.constant 0 : index
    %c0_95 = arith.constant 0 : index
    %227 = vector.load %arg3[%c0_92, %c3_93, %c0_94, %c0_95] : memref<1x4x8x256xf32, #tpu.memory_space<vmem>>, vector<1x1x8x256xf32>
    %228 = vector.shape_cast %227 : vector<1x1x8x256xf32> to vector<8x256xf32>
    %229 = vector.shape_cast %226 : vector<8x256xf32> to vector<1x1x8x256xf32>
    tpu.vector_store %arg3[%c0_92, %c3_93, %c0_94, %c0_95], %229 {strides = array<i32>} : memref<1x4x8x256xf32, #tpu.memory_space<vmem>>, vector<1x1x8x256xf32>,
    return
  }
  func.func @transform_0(%arg0: i32) -> (i32, i32, i32) {
    %c0_i32 = arith.constant 0 : i32
    %c0_i32_0 = arith.constant 0 : i32
    %c0_i32_1 = arith.constant 0 : i32
    return %arg0, %c0_i32, %c0_i32_0 : i32, i32, i32
  }
  func.func @transform_1(%arg0: i32) -> (i32, i32, i32) {
    %c0_i32 = arith.constant 0 : i32
    %c0_i32_0 = arith.constant 0 : i32
    %c0_i32_1 = arith.constant 0 : i32
    %c0_i32_2 = arith.constant 0 : i32
    return %c0_i32, %c0_i32_0, %c0_i32_1 : i32, i32, i32
  }
  func.func @transform_2(%arg0: i32) -> (i32, i32, i32, i32) {
    %c0_i32 = arith.constant 0 : i32
    %c0_i32_0 = arith.constant 0 : i32
    %c0_i32_1 = arith.constant 0 : i32
    %c0_i32_2 = arith.constant 0 : i32
    return %arg0, %c0_i32, %c0_i32_0, %c0_i32_1 : i32, i32, i32, i32
  }
}

</mosaic_0001>

<bundles_post_ra>
// kernel: tpu_custom_call.1
= control target key start
LH: loop header
LB: loop body
LE: loop exit
PB: predicated region body
PF: predicated region fallthrough
CT: control target
= control target key end

     0   :  { %7 = vsyncpa [#allocation3], 0  ;;  %s2317_s0 = inlined_call_operand.vmem [shape: f32[2,4,256], index: 0, kind: input, shape index: {}]   ;;  %s2318_s1 = inlined_call_operand.vmem [shape: f32[16,8,4], index: 1, kind: input, shape index: {}]   ;;  %s2319_s2 = inlined_call_operand.hbm [shape: f32[2,4,8,256], index: 2, kind: output, shape index: {}]  }
   0x1   :  { %9 = vsyncpa [#allocation3 + $0x1], 0  ;;  %s1988_s9 = smov 0   ;;  %s1990_s10 = smov 0  }
   0x2   :  { %s1992_s11 = smov 0   ;;  %s1994_s12 = smov 0  }
   0x3 LB: > { %s2009_s13 = sadd.s32 4294967295, %s1964_s12   ;;  %s1747_s14 = sadd.s32 4294967294, %s1964_s12   ;;  %s1964_s12 = sphi %s1994_s12, %s2325_s12   ;;  %s1960_s11 = sphi %s1992_s11, %s2324_s11   ;;  %s1956_s10 = sphi %s1990_s10, %s2323_s10   ;;  %s1952_s9 = sphi %s1988_s9, %s2322_s9  }
   0x4   : > { %s2013_s15 = sadd.s32 1, %s1964_s12   ;;  %s69_s16 = sadd.s32 1, %s1960_s11 }
   0x5   : > { %s66_s17 = ssub.s32 %s1964_s12, %s2013_s15  ;;  %p79_p0 = scmp.ne.s32.totalorder %s1960_s11, %s1956_s10 }
   0x6   : > { %p67_p1 = scmp.eq.s32.totalorder %s66_s17, 0  ;;  %p80_p2 = scmp.eq.s32.totalorder %s2009_s13, 1 }
   0x7   : > { %p85_p3 = scmp.ne.s32.totalorder %s1956_s10, %s1952_s9  ;;  %p86_p4 = scmp.eq.s32.totalorder %s1747_s14, 1 }
   0x8   : > { %s2024_s18 = scalar_select %p67_p1, %s1960_s11, %s69_s16  }
   0x9   : > { %p2026_p5 = por %p80_p2, %p79_p0  ;;  %p2030_p6 = por %p86_p4, %p85_p3 }
   0xa   : > { %p1750_p7 = scmp.ge.s32.totalorder %s1964_s12, 1  ;;  %p115_p8 = scmp.lt.s32.totalorder %s1964_s12, 3 }
   0xc   : > { %p116_p9 = pnand %p1750_p7, %p115_p8 }
   0xd   : > { %p137_p10 = scmp.lt.s32.totalorder (!%p116_p9), %s2009_s13, 1  ;;  %s1966_s26 = smov (!%p116_p9), 127   ;;  %v1969_v2 = vmov (!%p116_p9), 0.0   ;;  %v143_v3 = vlaneseq (!%p116_p9)  ;;  %vm201_vm0 = vcmask (!%p116_p9), 1039360   ;;  %vm185_vm3 = vcmask (!%p116_p9), 7168   ;;  %v1754_v24 = vld [vmem:[%s2318_s1 + $0x8] sm:$0xff] (!%p116_p9) }
   0xe   : > { %119 = sbr.rel (%p116_p9) target bundleno = 716 (0x2cc), region = 28  ;;  %s1967_s27 = smov (!%p116_p9), 1   ;;  %320 = vmatprep.mubr.f32.mxu0 (!%p116_p9), %v1969_v2  ;;  %497 = vmatprep.mubr.f32.mxu1 (!%p116_p9), %v1969_v2  ;;  %vm220_vm6 = vcmask (!%p116_p9), 130048   ;;  %vm249_vm7 = vcmask (!%p116_p9), 1043456   ;;  %vm245_vm9 = vcmask (!%p116_p9), 31744   ;;  %v1762_v30 = vld [vmem:[%s2318_s1 + $0x28] sm:$0xff] (!%p116_p9) }
   0xf   : > { %s1968_s28 = smov (!%p116_p9), 16   ;;  %v2057_v4 = vand.u32 (!%p116_p9), 127, %v143_v3  ;;  %s1970_s3 = smov (!%p116_p9), 112   ;;  %v231_v36 = vld [vmem:[%s2318_s1] sm:$0xff] (!%p116_p9)  ;;  %v1769_v39 = vld [vmem:[%s2318_s1 + $0x10] sm:$0xff] (!%p116_p9)  ;;  %v1774_v43 = vld [vmem:[%s2318_s1 + $0x18] sm:$0xff] (!%p116_p9) }
  0x10   : > { %v1761_v38 = vld [vmem:[%s2318_s1 + $0x20] sm:$0xff] (!%p116_p9)  ;;  %v1778_v42 = vld [vmem:[%s2318_s1 + $0x30] sm:$0xff] (!%p116_p9)  ;;  %v1782_v44 = vld [vmem:[%s2318_s1 + $0x48] sm:$0xff] (!%p116_p9)  ;;  %vm1210_vm10 = vcmask (!%p116_p9), 916480   ;;  %s1971_s7 = smov (!%p116_p9), [#allocation2]  }
  0x11   : > { %v2060_v5 = vadd.s32 (!%p116_p9), 128, %v2057_v4  ;;  %v150_v6 = vand.u32 (!%p116_p9), 15, %v2057_v4  ;;  %vm174_vm8 = vcmp.lt.s32.totalorder (!%p116_p9), %v2057_v4, 16  ;;  %v1794_v48 = vld [vmem:[%s2318_s1 + $0x68] sm:$0xff] (!%p116_p9)  ;;  %v1773_v50 = vld [vmem:[%s2318_s1 + $0x40] sm:$0xff] (!%p116_p9)  ;;  %v1790_v55 = vld [vmem:[%s2318_s1 + $0x38] sm:$0xff] (!%p116_p9) }
  0x12   : > { %v1789_v56 = vld [vmem:[%s2318_s1 + $0x60] sm:$0xff] (!%p116_p9)  ;;  %v1801_v61 = vld [vmem:[%s2318_s1 + $0x50] sm:$0xff] (!%p116_p9)  ;;  %s1906_s8 = sshll.u32 (!%p116_p9), %s1971_s7, 4  ;;  %s1907_s8 = int_to_ptr.vmem [resolvable:$false] %s1906_s8 }
  0x13   : > { %v157_v7 = vand.u32 (!%p116_p9), 15, %v2060_v5  ;;  %vm172_vm1 = vcmp.eq.s32.totalorder (!%p116_p9), %v150_v6, 15  ;;  %vm170_vm4 = vcmp.eq.s32.totalorder (!%p116_p9), %v150_v6, 0  ;;  %vm177_vm11 = vcmp.ge.s32.totalorder (!%p116_p9), %v2060_v5, 240  ;;  %v1809_v62 = vld [vmem:[%s2318_s1 + $0x70] sm:$0xff] (!%p116_p9)  ;;  %s1908_s14 = scalar_lea.vmem (!%p116_p9), %s1907_s8, 2048 }
  0x15   : > { %s138_s21 = scalar_select %p137_p10, %s2009_s13, 1  ;;  %vm173_vm2 = vcmp.eq.s32.totalorder %v157_v7, 15  ;;  %vm171_vm5 = vcmp.eq.s32.totalorder %v157_v7, 0 }
  0x17   : > { %s1828_s22 = sshll.u32 %s138_s21, 3 }
  0x18   : > { %s141_s25 = scalar_lea.vmem %s2317_s0, %s1828_s22 }
  0x19   : > { %v2041_v0 = vld [vmem:[%s141_s25] sm:$0xff]  ;;  %s134_s25 = sand.u32 1, %s1956_s10  }
  0x1a   : > { %197 = vrot.lane.b32.xlu0 %v2041_v0, %s1966_s26  ;;  %v2046_v1 = vcombine.high %v2041_v0, %v2041_v0  ;;  %s2275_s5 = scalar_lea.sflag [#allocation3], %s134_s25 }
  0x1c   : > { %180 = vrot.lane.b32.xlu1 %v2046_v1, %s1967_s27 }
  0x1e   : > { %199 = vrot.lane.b32.xlu0 %v2046_v1, %s1966_s26  ;;  %s1751_s26 = sshll.u32 %s134_s25, 6 }
  0x1f   : > { %s136_s29 = scalar_lea.vmem [#allocation2], %s1751_s26 }
  0x20   : > { %183 = vrot.lane.b32.xlu1 %v2041_v0, %s1967_s27  ;;  %s1829_s27 = sshll.u32 %s2009_s13, 10  ;;  %s1685_s30 = sshll.u32 %s136_s29, 4  ;;  %s2271_s30 = int_to_ptr.vmem [resolvable:$true] %s1685_s30 }
  0x21   : > { %s2267_s4 = scalar_lea.hbm %s2319_s2, %s1829_s27  ;;  %s1902_s6 = scalar_lea.vmem %s2271_s30, 1024 }
  0x22   : > { %232 = vrot.lane.b32.xlu0 %v2046_v1, %s1968_s28  ;;  %p1903_p11 = scmp.ne.s32.totalorder %s2271_s30, %s1902_s6  ;;  %p1909_p0 = scmp.lt.s32.totalorder %s2271_s30, %s1907_s8 }
  0x23   : > { %p1910_p1 = scmp.lt.s32.totalorder %s1908_s14, %s1902_s6 }
  0x24   : > { %235 = vrot.lane.b32.xlu1 %v2041_v0, %s1968_s28  ;;  %p1904_p12 = pnand %p1903_p11, %p2026_p5 }
  0x25   : > { %p1911_p2 = por %p1910_p1, %p1909_p0 }
  0x26   : > { %p1905_p13 = pneg %p1904_p12 }
  0x28   : > { %p1912_p3 = pnand %p1911_p2, %p1905_p13 }
  0x8c   : > { %v198_v8 = vpop.permute.xlu0 %197 }
  0x8e   : > { %v181_v9 = vpop.permute.xlu1 %180 }
  0x90   : > { %v200_v10 = vpop.permute.xlu0 %199 }
  0x91   : > { %v202_v11 = vsel %vm201_vm0, %v198_v8, %v200_v10  ;;  %v206_v12 = vsel %vm201_vm0, %v200_v10, %v198_v8 }
  0x92   : > { %v2065_v13 = vsel %vm172_vm1, %v2041_v0, %v202_v11  ;;  %v2068_v14 = vsel %vm173_vm2, %v2046_v1, %v206_v12  ;;  %v184_v15 = vpop.permute.xlu1 %183 }
  0x93   : > { %v186_v16 = vsel %vm185_vm3, %v184_v15, %v181_v9  ;;  %v189_v17 = vsel %vm185_vm3, %v181_v9, %v184_v15  ;;  %410 = vrot.lane.b32.xlu0 %v2068_v14, %s1968_s28  ;;  %414 = vrot.lane.b32.xlu1 %v2065_v13, %s1968_s28 }
  0x94   : > { %v233_v18 = vpop.permute.xlu0 %232  ;;  %v2076_v19 = vsel %vm170_vm4, %v2041_v0, %v189_v17  ;;  %v2079_v20 = vsel %vm171_vm5, %v2046_v1, %v186_v16 }
  0x96   : > { %v236_v21 = vpop.permute.xlu1 %235 }
  0x97   : > { %214 = vrot.lane.b32.xlu0 %v2079_v20, %s1968_s28  ;;  %218 = vrot.lane.b32.xlu1 %v2076_v19, %s1968_s28  ;;  %v240_v22 = vsel %vm220_vm6, %v233_v18, %v236_v21  ;;  %v237_v23 = vsel %vm220_vm6, %v236_v21, %v233_v18 }
  0x98   : > { %1755 = vmatprep.subr.msk.mxu0 %vm249_vm7, %v237_v23  ;;  %v241_v25 = vsel %vm174_vm8, %v2041_v0, %v240_v22 }
  0x99   : > { %1756 = vmatpush1.msk.msra.mxu0 %vm249_vm7, %v241_v25 }
  0x9a   : > { %1757 = vmatmul.mubr.msk.f32.vlgmr.msra.gmra.mrb[0].mxu0 %vm245_vm9, %v1754_v24 }
  0x9b   : > { %1206 = vrot.lane.b32.xlu0 %v2076_v19, %s1970_s3  ;;  %1208 = vrot.lane.b32.xlu1 %v2079_v20, %s1970_s3 }
  0x9c   : > { %400 = vmatprep.mubr.f32.mxu0 %v1969_v2 }
  0x9f   : > { %1306 = vrot.lane.b32.xlu0 %v2041_v0, %s1970_s3  ;;  %1308 = vrot.lane.b32.xlu1 %v2046_v1, %s1970_s3 }
  0xa3   : > { %1479 = vrot.lane.b32.xlu0 %v2065_v13, %s1970_s3  ;;  %1481 = vrot.lane.b32.xlu1 %v2068_v14, %s1970_s3 }
 0x105   : > { %v415_v26 = vpop.permute.xlu1 %414  ;;  %v411_v27 = vpop.permute.xlu0 %410 }
 0x106   : > { %v419_v28 = vsel %vm220_vm6, %v411_v27, %v415_v26  ;;  %v416_v29 = vsel %vm220_vm6, %v415_v26, %v411_v27 }
 0x107   : > { %1763 = vmatprep.subr.msk.mxu1 %vm249_vm7, %v416_v29  ;;  %v420_v31 = vsel %vm174_vm8, %v2065_v13, %v419_v28 }
 0x108   : > { %1764 = vmatpush1.msk.msra.mxu1 %vm249_vm7, %v420_v31 }
 0x109   : > { %v219_v32 = vpop.permute.xlu1 %218  ;;  %1765 = vmatmul.mubr.msk.f32.vlgmr.msra.gmra.mrb[0].mxu1 %vm245_vm9, %v1762_v30  ;;  %1766 = vmatprep.subr.msk.mxu1 %vm249_vm7, %v237_v23  ;;  %v215_v33 = vpop.permute.xlu0 %214 }
 0x10a   : > { %v221_v34 = vsel %vm220_vm6, %v219_v32, %v215_v33  ;;  %v224_v35 = vsel %vm220_vm6, %v215_v33, %v219_v32  ;;  %1767 = vmatpush1.msk.msra.mxu1 %vm249_vm7, %v241_v25  ;;  %571 = vmatprep.mubr.f32.mxu1 %v1969_v2 }
 0x10b   : > { %v229_v37 = vsel %vm174_vm8, %v2076_v19, %v224_v35  ;;  %1758 = vmatprep.subr.msk.mxu0 %vm249_vm7, %v221_v34  ;;  %1779 = vmatprep.subr.msk.mxu1 %vm249_vm7, %v2046_v1 }
 0x10c   : > { %1759 = vmatpush1.msk.msra.mxu0 %vm249_vm7, %v229_v37 }
 0x10d   : > { %1760 = vmatmul.mubr.msk.f32.vlgmr.msra.gmra.mrb[0].mxu0 %vm245_vm9, %v231_v36  ;;  %1770 = vmatprep.subr.msk.mxu0 %vm249_vm7, %v2079_v20  ;;  %v1209_v40 = vpop.permute.xlu1 %1208  ;;  %v1207_v41 = vpop.permute.xlu0 %1206 }
 0x10e   : > { %1771 = vmatpush1.msk.msra.mxu0 %vm249_vm7, %v2076_v19  ;;  %651 = vmatprep.mubr.f32.mxu0 %v1969_v2  ;;  %v1215_v51 = vsel %vm1210_vm10, %v1209_v40, %v1207_v41  ;;  %v1211_v59 = vsel %vm1210_vm10, %v1207_v41, %v1209_v40 }
 0x10f   : > { %1775 = vmatprep.subr.msk.mxu0 %vm249_vm7, %v2046_v1  ;;  %v1221_v54 = vsel %vm177_vm11, %v2079_v20, %v1215_v51 }
 0x111   : > { %1768 = vmatmul.mubr.msk.f32.vlgmr.msra.gmra.mrb[0].mxu1 %vm245_vm9, %v1761_v38  ;;  %v1309_v45 = vpop.permute.xlu1 %1308  ;;  %v1307_v46 = vpop.permute.xlu0 %1306 }
 0x112   : > { %1780 = vmatpush1.msk.msra.mxu1 %vm249_vm7, %v2041_v0  ;;  %813 = vmatprep.mubr.f32.mxu1 %v1969_v2  ;;  %v1314_v47 = vsel %vm1210_vm10, %v1309_v45, %v1307_v46  ;;  %v1310_v57 = vsel %vm1210_vm10, %v1307_v46, %v1309_v45 }
 0x113   : > { %1783 = vmatprep.subr.msk.mxu1 %vm249_vm7, %v2046_v1  ;;  %v1316_v49 = vsel %vm177_vm11, %v2046_v1, %v1314_v47 }
 0x115   : > { %1772 = vmatmul.mubr.msk.f32.vlgmr.msra.gmra.mrb[0].mxu0 %vm245_vm9, %v1769_v39  ;;  %v1482_v52 = vpop.permute.xlu1 %1481  ;;  %v1480_v53 = vpop.permute.xlu0 %1479 }
 0x116   : > { %1776 = vmatpush1.msk.msra.mxu0 %vm249_vm7, %v2041_v0  ;;  %735 = vmatprep.mubr.f32.mxu0 %v1969_v2  ;;  %v1487_v58 = vsel %vm1210_vm10, %v1482_v52, %v1480_v53  ;;  %v1483_v63 = vsel %vm1210_vm10, %v1480_v53, %v1482_v52 }
 0x117   : > { %1795 = vmatprep.subr.msk.mxu0 %vm249_vm7, %v2068_v14  ;;  %v1489_v60 = vsel %vm177_vm11, %v2068_v14, %v1487_v58 }
 0x119   : > { %1781 = vmatmul.mubr.msk.f32.vlgmr.msra.gmra.mrb[0].mxu1 %vm245_vm9, %v1778_v42 }
 0x11a   : > { %1784 = vmatpush1.msk.msra.mxu1 %vm249_vm7, %v2041_v0  ;;  %891 = vmatprep.mubr.f32.mxu1 %v1969_v2 }
 0x11b   : > { %1786 = vmatprep.subr.msk.mxu1 %vm249_vm7, %v2079_v20 }
 0x11d   : > { %1777 = vmatmul.mubr.msk.f32.vlgmr.msra.gmra.mrb[0].mxu0 %vm245_vm9, %v1774_v43  ;;  %1785 = vmatmul.mubr.msk.f32.vlgmr.msra.gmra.mrb[2].mxu1 %vm245_vm9, %v1782_v44 }
 0x11e   : > { %1787 = vmatpush1.msk.msra.mxu1 %vm249_vm7, %v2076_v19  ;;  %1796 = vmatpush1.msk.msra.mxu0 %vm249_vm7, %v2065_v13 }
 0x11f   : > { %1791 = vmatprep.subr.msk.mxu1 %vm249_vm7, %v2068_v14  ;;  %1125 = vmatprep.mubr.f32.mxu0 %v1969_v2 }
 0x120   : > { %965 = vmatprep.mubr.f32.mxu1 %v1969_v2  ;;  %1798 = vmatprep.subr.msk.mxu0 %vm249_vm7, %v2046_v1  ;;  %v1813_v1 = vld [vmem:[%s2318_s1 + $0x78] sm:$0xff] }
 0x121   : > { %1797 = vmatmul.mubr.msk.f32.vlgmr.msra.gmra.mrb[2].mxu0 %vm245_vm9, %v1794_v48 }
 0x122   : > { %1799 = vmatpush1.msk.msra.mxu0 %vm249_vm7, %v2041_v0  ;;  %1199 = vmatprep.mubr.f32.mxu0 %v1969_v2  ;;  %v1805_v0 = vld [vmem:[%s2318_s1 + $0x58] sm:$0xff] }
 0x123   : > { %1810 = vmatprep.subr.msk.mxu0 %vm249_vm7, %v1316_v49 }
 0x125   : > { %1788 = vmatmul.mubr.msk.f32.vlgmr.msra.gmra.mrb[2].mxu1 %vm245_vm9, %v1773_v50 }
 0x126   : > { %1792 = vmatpush1.msk.msra.mxu1 %vm249_vm7, %v2065_v13  ;;  %1047 = vmatprep.mubr.f32.mxu1 %v1969_v2 }
 0x127   : > { %1802 = vmatprep.subr.msk.mxu1 %vm249_vm7, %v1221_v54 }
 0x129   : > { %1793 = vmatmul.mubr.msk.f32.vlgmr.msra.gmra.mrb[0].mxu1 %vm245_vm9, %v1790_v55  ;;  %1800 = vmatmul.mubr.msk.f32.vlgmr.msra.gmra.mrb[2].mxu0 %vm245_vm9, %v1789_v56 }
 0x12a   : > { %1803 = vmatpush1.msk.msra.mxu1 %vm249_vm7, %v1211_v59  ;;  %1811 = vmatpush1.msk.msra.mxu0 %vm249_vm7, %v1310_v57 }
 0x12b   : > { %1814 = vmatprep.subr.msk.mxu0 %vm249_vm7, %v1489_v60  ;;  %1297 = vmatprep.mubr.f32.mxu1 %v1969_v2 }
 0x12c   : > { %1806 = vmatprep.subr.msk.mxu1 %vm249_vm7, %v1316_v49  ;;  %1470 = vmatprep.mubr.f32.mxu0 %v1969_v2 }
 0x12d   : > { %1804 = vmatmul.mubr.msk.f32.vlgmr.msra.gmra.mrb[2].mxu1 %vm245_vm9, %v1801_v61 }
 0x12e   : > { %1807 = vmatpush1.msk.msra.mxu1 %vm249_vm7, %v1310_v57  ;;  %1392 = vmatprep.mubr.f32.mxu1 %v1969_v2 }
 0x131   : > { %1812 = vmatmul.mubr.msk.f32.vlgmr.msra.gmra.mrb[2].mxu0 %vm245_vm9, %v1809_v62 }
 0x132   : > { %1815 = vmatpush1.msk.msra.mxu0 %vm249_vm7, %v1483_v63  ;;  %1565 = vmatprep.mubr.f32.mxu0 %v1969_v2 }
 0x135   : > { %1808 = vmatmul.mubr.msk.f32.vlgmr.msra.gmra.mrb[2].mxu1 %vm245_vm9, %v1805_v0 }
 0x139   : > { %1816 = vmatmul.mubr.msk.f32.vlgmr.msra.gmra.mrb[2].mxu0 %vm245_vm9, %v1813_v1 }
 0x1f0   : > { %v2248_v3 = vpop.f32.mrb[0].mxu0 }
 0x1f1   : > { %v2250_v4 = vpop.f32.mrb[1].mxu0  ;;  %v1578_v5 = vmul.f32 %v2248_v3, %v2248_v3 }
 0x1f2   : > { %v1574_v6 = vadd.f32 %v2250_v4, %v2248_v3  ;;  %v1579_v2 = vmul.f32 %v2250_v4, %v2250_v4 }
 0x1f4   : > { %1575 = vadd.xlane.f32.xlu0 %v1574_v6  ;;  %v1580_v7 = vadd.f32 %v1579_v2, %v1578_v5 }
 0x1f8   : > { %1581 = vadd.xlane.f32.xlu0 %v1580_v7 }
 0x1fc   : > { %v1049_v8 = vpop.f32.mrb[0].mxu1 }
 0x1fd   : > { %v1051_v9 = vpop.f32.mrb[1].mxu1  ;;  %v1588_v10 = vmul.f32 %v1049_v8, %v1049_v8 }
 0x1fe   : > { %v1584_v11 = vadd.f32 %v1051_v9, %v1049_v8  ;;  %v1589_v12 = vmul.f32 %v1051_v9, %v1051_v9 }
 0x200   : > { %1585 = vadd.xlane.f32.xlu1 %v1584_v11  ;;  %v1590_v13 = vadd.f32 %v1589_v12, %v1588_v10 }
 0x202   : > { %1591 = vadd.xlane.f32.xlu0 %v1590_v13 }
 0x208   : > { %v1394_v14 = vpop.f32.mrb[2].mxu1 }
 0x209   : > { %v1396_v15 = vpop.f32.mrb[3].mxu1  ;;  %v1598_v16 = vmul.f32 %v1394_v14, %v1394_v14 }
 0x20a   : > { %v1599_v17 = vmul.f32 %v1396_v15, %v1396_v15  ;;  %v1594_v18 = vadd.f32 %v1396_v15, %v1394_v14 }
 0x20c   : > { %1595 = vadd.xlane.f32.xlu1 %v1594_v18  ;;  %v1567_v19 = vpop.f32.mrb[2].mxu0  ;;  %v1600_v20 = vadd.f32 %v1599_v17, %v1598_v16 }
 0x20d   : > { %v1569_v21 = vpop.f32.mrb[3].mxu0  ;;  %v1608_v22 = vmul.f32 %v1567_v19, %v1567_v19 }
 0x20e   : > { %v1609_v23 = vmul.f32 %v1569_v21, %v1569_v21  ;;  %1601 = vadd.xlane.f32.xlu0 %v1600_v20  ;;  %v1604_v24 = vadd.f32 %v1569_v21, %v1567_v19 }
 0x210   : > { %1605 = vadd.xlane.f32.xlu1 %v1604_v24  ;;  %v1610_v25 = vadd.f32 %v1609_v23, %v1608_v22 }
 0x212   : > { %1611 = vadd.xlane.f32.xlu0 %v1610_v25 }
 0x281   : > { %v1576_v26 = vpop.xlane.xlu0 %1575 }
 0x285   : > { %v1582_v27 = vpop.xlane.xlu0 %1581 }
 0x28d   : > { %v1586_v28 = vpop.xlane.xlu1 %1585 }
 0x28e   : > { %v1587_v31 = vadd.f32 %v1586_v28, %v1576_v26 }
 0x28f   : > { %v1592_v29 = vpop.xlane.xlu0 %1591 }
 0x290   : > { %v1593_v33 = vadd.f32 %v1592_v29, %v1582_v27 }
 0x299   : > { %v1596_v30 = vpop.xlane.xlu1 %1595 }
 0x29a   : > { %v1597_v34 = vadd.f32 %v1596_v30, %v1587_v31 }
 0x29b   : > { %v1602_v32 = vpop.xlane.xlu0 %1601 }
 0x29c   : > { %v1603_v36 = vadd.f32 %v1602_v32, %v1593_v33 }
 0x29d   : > { %v1606_v35 = vpop.xlane.xlu1 %1605 }
 0x29e   : > { %v1607_v37 = vadd.f32 %v1606_v35, %v1597_v34 }
 0x29f   : > { %v1612_v38 = vpop.xlane.xlu0 %1611 }
 0x2a0   : > { %v1614_v39 = vmul.f32 0.0009765625, %v1607_v37  ;;  %v1613_v40 = vadd.f32 %v1612_v38, %v1603_v36 }
 0x2a2   : > { %v1616_v41 = vmul.f32 %v1614_v39, %v1614_v39  ;;  %v1615_v42 = vmul.f32 0.0009765625, %v1613_v40  ;;  %v1620_v45 = vsub.f32 %v2248_v3, %v1614_v39  ;;  %v1621_v46 = vsub.f32 %v2250_v4, %v1614_v39 }
 0x2a3   : > { %v1632_v47 = vsub.f32 %v1049_v8, %v1614_v39  ;;  %v1633_v48 = vsub.f32 %v1051_v9, %v1614_v39  ;;  %v1645_v50 = vsub.f32 %v1394_v14, %v1614_v39  ;;  %v1646_v51 = vsub.f32 %v1396_v15, %v1614_v39 }
 0x2a4   : > { %v1617_v43 = vsub.f32 %v1615_v42, %v1616_v41  ;;  %v1658_v52 = vsub.f32 %v1567_v19, %v1614_v39  ;;  %v1659_v53 = vsub.f32 %v1569_v21, %v1614_v39 }
 0x2a6   : > { %v1618_v44 = vadd.f32 1e-05, %v1617_v43 }
 0x2a8   : > { %1900 = vrsqrt.f32 %v1618_v44 }
 0x2b2   : > { %v1901_v49 = vpop.eup %1900 }
 0x2b3   : > { %v1622_v54 = vmul.f32 %v1901_v49, %v1620_v45  ;;  %v1623_v55 = vmul.f32 %v1901_v49, %v1621_v46  ;;  %v1634_v56 = vmul.f32 %v1901_v49, %v1632_v47  ;;  %v1635_v57 = vmul.f32 %v1901_v49, %v1633_v48 }
 0x2b4   : > { %v1647_v58 = vmul.f32 %v1901_v49, %v1645_v50  ;;  %v1648_v59 = vmul.f32 %v1901_v49, %v1646_v51  ;;  %v1660_v60 = vmul.f32 %v1901_v49, %v1658_v52  ;;  %v1661_v61 = vmul.f32 %v1901_v49, %v1659_v53 }
 0x2b5   : > { %vm1624_vm12 = vcmp.ge.f32.partialorder %v1622_v54, 0.0  ;;  %vm1625_vm13 = vcmp.ge.f32.partialorder %v1623_v55, 0.0  ;;  %v1626_v62 = vmul.f32 0.01, %v1622_v54  ;;  %v1627_v63 = vmul.f32 0.01, %v1623_v55 }
 0x2b6   : > { %vm1636_vm14 = vcmp.ge.f32.partialorder %v1634_v56, 0.0  ;;  %vm1637_vm15 = vcmp.ge.f32.partialorder %v1635_v57, 0.0  ;;  %v1638_v0 = vmul.f32 0.01, %v1634_v56  ;;  %v1639_v1 = vmul.f32 0.01, %v1635_v57 }
 0x2b7   : > { %v1628_v3 = vsel %vm1624_vm12, %v1622_v54, %v1626_v62  ;;  %v1629_v4 = vsel %vm1625_vm13, %v1623_v55, %v1627_v63  ;;  %vm1649_vm0 = vcmp.ge.f32.partialorder %v1647_v58, 0.0  ;;  %vm1650_vm1 = vcmp.ge.f32.partialorder %v1648_v59, 0.0 }
 0x2b8   : > { %1630 = vst [vmem:[%s136_s29] sm:$0xff] %v1628_v3  ;;  %1631 = vst [vmem:[%s136_s29 + $0x8] sm:$0xff] %v1629_v4  ;;  %v1640_v5 = vsel %vm1636_vm14, %v1634_v56, %v1638_v0  ;;  %v1641_v6 = vsel %vm1637_vm15, %v1635_v57, %v1639_v1  ;;  %v1651_v2 = vmul.f32 0.01, %v1647_v58  ;;  %v1652_v7 = vmul.f32 0.01, %v1648_v59 }
 0x2b9   : > { %1817 = vst [vmem:[%s136_s29 + $0x10] sm:$0xff] %v1640_v5  ;;  %1818 = vst [vmem:[%s136_s29 + $0x18] sm:$0xff] %v1641_v6  ;;  %vm1662_vm2 = vcmp.ge.f32.partialorder %v1660_v60, 0.0  ;;  %vm1663_vm3 = vcmp.ge.f32.partialorder %v1661_v61, 0.0  ;;  %v1664_v8 = vmul.f32 0.01, %v1660_v60 }
 0x2ba   : > { %v1665_v9 = vmul.f32 0.01, %v1661_v61  ;;  %v1653_v10 = vsel %vm1649_vm0, %v1647_v58, %v1651_v2  ;;  %v1654_v11 = vsel %vm1650_vm1, %v1648_v59, %v1652_v7 }
 0x2bb   : > { %1819 = vst [vmem:[%s136_s29 + $0x20] sm:$0xff] %v1653_v10  ;;  %1820 = vst [vmem:[%s136_s29 + $0x28] sm:$0xff] %v1654_v11  ;;  %v1666_v12 = vsel %vm1662_vm2, %v1660_v60, %v1664_v8 }
 0x2bc   : > { %v1667_v13 = vsel %vm1663_vm3, %v1661_v61, %v1665_v9  ;;  %1821 = vst [vmem:[%s136_s29 + $0x30] sm:$0xff] %v1666_v12 }
 0x2bd   : > { %1822 = vst [vmem:[%s136_s29 + $0x38] sm:$0xff] %v1667_v13 }
 0x2be   : > { %1915 = shalt.err (!%p1912_p3)
}
 0x2bf   : > { %s1916_s16 = scalar_lea.hbm %s2267_s4, 1024  ;;  %s1920_s22 = scalar_lea.hbm %s2319_s2, 2048 }
 0x2c0   : > { %p1917_p4 = scmp.ne.s32.totalorder %s2267_s4, %s1916_s16  ;;  %p1921_p9 = scmp.lt.u32.totalorder %s2267_s4, %s2319_s2 }
 0x2c1   : > { %p1922_p10 = scmp.lt.u32.totalorder %s1920_s22, %s1916_s16  ;;  %p1924_p12 = scmp.lt.u32.totalorder %s1916_s16, %s2267_s4 }
 0x2c2   : > { %p1918_p7 = pnand %p1917_p4, %p2026_p5 }
 0x2c3   : > { %p1923_p11 = por %p1922_p10, %p1921_p9 }
 0x2c4   : > { %p1919_p8 = pneg %p1918_p7 }
 0x2c5   : > { %p1925_p13 = por %p1924_p12, %p1923_p11 }
 0x2c7   : > { %p1926_p0 = pnand %p1925_p13, %p1919_p8 }
 0x2c9   : > { %1929 = shalt.err (!%p1926_p0)
}
 0x2ca   : > { %s1972_s25 = smov 256  }
 0x2cb   : > { %1854 = dma.vmem_to_hbm [thread:$0]  (%p2026_p5), %s2271_s30, 1024, %s2267_s4, %s2275_s5, %s1972_s25, %s1972_s25, %s1968_s28  }
 0x2cc PF: > { %p1860_p1 = scmp.ge.s32.totalorder %s1964_s12, 2  ;;  %s1700_s26 = sand.u32 1, %s1952_s9  }
 0x2cd   : > { %s1701_s27 = scalar_lea.sflag [#allocation3], %s1700_s26 }
 0x2ce   : > { %p1857_p2 = pnand %p1860_p1, %p2030_p6 }
 0x2d0   : > { %1947 = dma.done.wait (!%p1857_p2), %s1701_s27, 1024  }
 0x2d1   : > { %1949 = vsyncadd (!%p1857_p2), %s1701_s27, 4294966272  ;;  %p12_p3 = scmp.ge.s32.totalorder %s2013_s15, 4   ;;  %s2322_s9 = smov %s1956_s10 }
 0x2d2   : > { %s2323_s10 = smov %s1960_s11  ;;  %s2324_s11 = smov %s2024_s18 }
 0x2d3   : > { %s2325_s12 = smov %s2013_s15  ;;  %14 = sbr.rel (!%p12_p3) target bundleno = 3 (0x3), region = 81 }
 0x2da   :  { %1706 = vsyncpa [#allocation3], 1 }
 0x2db   :  { %1708 = vsyncpa [#allocation3 + $0x1], 1 }

</bundles_post_ra>
